<compile_context>
chip_gen: v5e
topology: v5e:2x2
jax: 0.10.0
libtpu: 0.0.40
codegen_flags: <defaults>
</compile_context>

<pallas_src>
import functools

import jax
import jax.numpy as jnp
from jax.experimental import pallas as pl
from jax.experimental.pallas import tpu as pltpu


VMEM_SPEC = pl.BlockSpec(memory_space=pltpu.MemorySpace.VMEM)
SMEM_SPEC = pl.BlockSpec(memory_space=pltpu.MemorySpace.SMEM)


# ------------------------------ fused kernel ------------------------------- #

def _fused_step1_kernel(a_ref, x_ref, y_ref, w1c_ref, w2b_ref, vec_ref,
                        e_w1_ref, e_w2_ref, dw1_ref, db1_ref, dw2_ref, dln_ref,
                        o_ref, *, n_env, hidden, n_cls):
    f32 = jnp.float32
    a = a_ref[...]                                   # [N, N]
    x = x_ref[...]                                   # [N, D]
    n = x.shape[0]

    # ---- fused 2-layer GCN for BOTH towers (irrelavant_Learner | main gnn) ----
    # layer 1: weights concatenated along lanes -> one X@W, one A@(XW)
    b1 = vec_ref[0:1, :]                             # [1, 2H]  = [ir_b1 | g_b1]
    b2 = vec_ref[1:2, :]                             # [1, 2H]  = [ir_b2 | g_b2]
    xw = jnp.dot(x, w1c_ref[...], preferred_element_type=f32)        # [N, 2H]
    h1 = jnp.maximum(jnp.dot(a, xw, preferred_element_type=f32) + b1, 0.0)
    # layer 2: block-diagonal weight keeps the towers independent
    hw = jnp.dot(h1, w2b_ref[...], preferred_element_type=f32)       # [N, 2H]
    z = jnp.dot(a, hw, preferred_element_type=f32) + b2              # [N, 2H]
    ir_feature = jnp.tanh(z[:, :hidden])             # irrelavant_Learner output
    out = z[:, hidden:]                              # main gnn output

    # ---- Environment_Cls: Lin -> ReLU -> Lin -> ReLU ----
    e_b1 = vec_ref[2:3, 0:hidden]                    # [1, H]
    e_b2 = vec_ref[3:4, 0:n_env]                     # [1, E]
    he = jnp.maximum(
        jnp.dot(ir_feature, e_w1_ref[...], preferred_element_type=f32) + e_b1, 0.0)
    e_new = jnp.maximum(
        jnp.dot(he, e_w2_ref[...], preferred_element_type=f32) + e_b2, 0.0)   # [N, E]
    col_env = jnp.sum(e_new, axis=0, keepdims=True)                            # [1, E]

    # ---- one-hot labels ----
    cls_iota = jax.lax.broadcasted_iota(jnp.int32, (n, n_cls), 1)
    onehot = (cls_iota == y_ref[...]).astype(f32)                              # [N, C]

    # ---- Node_Cls layer-1 batched across the E heads (one [N, E*H] matmul) ----
    h_all = jnp.maximum(
        jnp.dot(out, dw1_ref[...], preferred_element_type=f32) + db1_ref[...], 0.0)

    # ---- per-env layer-2 + LayerNorm + NLL, accumulated into a scalar ----
    total = jnp.zeros((1, 1), f32)
    for i in range(n_env):                           # static loop, E is small
        hi = h_all[:, i * hidden:(i + 1) * hidden]   # [N, H]
        logits = (jnp.dot(hi, dw2_ref[i], preferred_element_type=f32)
                  + dln_ref[i:i + 1, 0:n_cls])       # + b2_i
        # LayerNorm over class dim (PyTorch eps = 1e-5)
        mu = jnp.mean(logits, axis=-1, keepdims=True)
        var = jnp.mean((logits - mu) ** 2, axis=-1, keepdims=True)
        gamma = dln_ref[i:i + 1, n_cls:2 * n_cls]
        beta = dln_ref[i:i + 1, 2 * n_cls:3 * n_cls]
        zi = (logits - mu) * jax.lax.rsqrt(var + 1e-5) * gamma + beta
        # stabilized log-softmax + NLL gather via one-hot
        m = jnp.max(zi, axis=-1, keepdims=True)
        lse = jnp.log(jnp.sum(jnp.exp(zi - m), axis=-1, keepdims=True)) + m
        logp = zi - lse
        nll_sum = jnp.sum(-jnp.sum(logp * onehot, axis=-1, keepdims=True),
                          axis=0, keepdims=True)     # [1, 1]  sum over nodes
        total = total + nll_sum * col_env[:, i:i + 1]

    # result = mean_i( mean_n(nll)_i * mean_n(e_new)_i ) = total / (E * N * N)
    o_ref[0, 0] = jnp.sum(total) * (1.0 / float(n_env * n * n))


# ------------------------------ model wrapper ------------------------------ #

@jax.jit
def model_forward_step1(params, a_hat, x, y):
    f32 = jnp.float32
    d, h = params["ir_w1"].shape
    e, _, c = params["dif_w2"].shape
    n = x.shape[0]

    # --- pack parameters into lane-dense slabs (fused by XLA under jit) ---
    w1_cat = jnp.concatenate([params["ir_w1"], params["g_w1"]], axis=1)    # [D, 2H]
    w2_blk = jnp.zeros((2 * h, 2 * h), f32)
    w2_blk = w2_blk.at[:h, :h].set(params["ir_w2"])
    w2_blk = w2_blk.at[h:, h:].set(params["g_w2"])                         # block-diag

    vec = jnp.zeros((8, 2 * h), f32)                                       # bias slab
    vec = vec.at[0, :].set(jnp.concatenate([params["ir_b1"], params["g_b1"]]))
    vec = vec.at[1, :].set(jnp.concatenate([params["ir_b2"], params["g_b2"]]))
    vec = vec.at[2, :h].set(params["e_b1"])
    vec = vec.at[3, :e].set(params["e_b2"])

    dif_w1_all = jnp.transpose(params["dif_w1"], (1, 0, 2)).reshape(h, e * h)
    dif_b1_all = params["dif_b1"].reshape(1, e * h)
    dif_ln = jnp.concatenate(
        [params["dif_b2"], params["dif_gamma"], params["dif_beta"]], axis=1)  # [E, 3C]

    kernel = functools.partial(_fused_step1_kernel, n_env=e, hidden=h, n_cls=c)
    loss = pl.pallas_call(
        kernel,
        out_shape=jax.ShapeDtypeStruct((1, 1), f32),
        in_specs=[VMEM_SPEC] * 12,
        out_specs=SMEM_SPEC,
    )(a_hat, x, y.reshape(-1, 1).astype(jnp.int32),
      w1_cat, w2_blk, vec,
      params["e_w1"], params["e_w2"],
      dif_w1_all, dif_b1_all, params["dif_w2"], dif_ln)
    return loss[0, 0]


# ------------------------------- reference --------------------------------- #

def reference_step1(params, a_hat, x, y):
    def gcn(a, xx, w, b, act):
        hh = a @ (xx @ w) + b
        return {"relu": jax.nn.relu, "tanh": jnp.tanh, "none": lambda z: z}[act](hh)

    ir = gcn(a_hat, gcn(a_hat, x, params["ir_w1"], params["ir_b1"], "relu"),
             params["ir_w2"], params["ir_b2"], "tanh")
    e_h = jax.nn.relu(ir @ params["e_w1"] + params["e_b1"])
    e_new = jax.nn.relu(e_h @ params["e_w2"] + params["e_b2"])
    out = gcn(a_hat, gcn(a_hat, x, params["g_w1"], params["g_b1"], "relu"),
              params["g_w2"], params["g_b2"], "none")

    n_env = params["dif_w1"].shape[0]
    losses = []
    for i in range(n_env):
        hh = jax.nn.relu(out @ params["dif_w1"][i] + params["dif_b1"][i])
        z = hh @ params["dif_w2"][i] + params["dif_b2"][i]
        mu = jnp.mean(z, -1, keepdims=True)
        var = jnp.mean((z - mu) ** 2, -1, keepdims=True)
        z = ((z - mu) * jax.lax.rsqrt(var + 1e-5)
             * params["dif_gamma"][i] + params["dif_beta"][i])
        logp = jax.nn.log_softmax(z, axis=-1)
        losses.append(jnp.mean(-logp[jnp.arange(z.shape[0]), y]))
    loss_vec = jnp.stack(losses)
    return jnp.mean(loss_vec * jnp.mean(e_new, axis=0))


# --------------------------------- main ------------------------------------ #

if __name__ == "__main__":
    N, D, H, C, E = 16, 32, 32, 4, 3   # nodes, feat dim, hidden, classes, envs

    key = jax.random.PRNGKey(0)
    keys = jax.random.split(key, 20)

    # node features, labels
    x = jax.random.normal(keys[0], (N, D), dtype=jnp.float32)
    y = jax.random.randint(keys[1], (N,), 0, C, dtype=jnp.int32)

    # random undirected graph -> symmetrically normalized dense adjacency A_hat
    a = (jax.random.uniform(keys[2], (N, N)) < 0.3).astype(jnp.float32)
    a = jnp.maximum(a, a.T)
    a = a + jnp.eye(N, dtype=jnp.float32)              # self loops
    deg = jnp.sum(a, axis=1)
    d_inv_sqrt = 1.0 / jnp.sqrt(deg)
    a_hat = a * d_inv_sqrt[:, None] * d_inv_sqrt[None, :]

    def winit(k, shape, scale=0.1):
        return scale * jax.random.normal(k, shape, dtype=jnp.float32)

    params = {
        # irrelavant_Learner GCN (D -> H -> H)
        "ir_w1": winit(keys[3], (D, H)), "ir_b1": jnp.zeros((H,), jnp.float32),
        "ir_w2": winit(keys[4], (H, H)), "ir_b2": jnp.zeros((H,), jnp.float32),
        # main gnn GCN (D -> H -> H)
        "g_w1": winit(keys[5], (D, H)), "g_b1": jnp.zeros((H,), jnp.float32),
        "g_w2": winit(keys[6], (H, H)), "g_b2": jnp.zeros((H,), jnp.float32),
        # Environment_Cls (H -> H -> E)
        "e_w1": winit(keys[7], (H, H)), "e_b1": jnp.zeros((H,), jnp.float32),
        "e_w2": winit(keys[8], (H, E)), "e_b2": jnp.zeros((E,), jnp.float32),
        # per-env Node_Cls heads (H -> H -> C), stacked over env axis
        "dif_w1": winit(keys[9], (E, H, H)), "dif_b1": jnp.zeros((E, H), jnp.float32),
        "dif_w2": winit(keys[10], (E, H, C)), "dif_b2": jnp.zeros((E, C), jnp.float32),
        "dif_gamma": jnp.ones((E, C), jnp.float32),
        "dif_beta": jnp.zeros((E, C), jnp.float32),
    }

    result = model_forward_step1(params, a_hat, x, y)
    result = jax.block_until_ready(result)

    ref = reference_step1(params, a_hat, x, y)
    assert jnp.allclose(result, ref, rtol=1e-4, atol=1e-5), (result, ref)

    print("KERNEL_OK")
</pallas_src>

<mosaic_0001>
module attributes {stable_mosaic.version = 11 : i64} {
  func.func @_fused_step1_kernel(%arg0: memref<16x16xf32, #tpu.memory_space<vmem>>, %arg1: memref<16x32xf32, #tpu.memory_space<vmem>>, %arg2: memref<16x1xi32, #tpu.memory_space<vmem>>, %arg3: memref<32x64xf32, #tpu.memory_space<vmem>>, %arg4: memref<64x64xf32, #tpu.memory_space<vmem>>, %arg5: memref<8x64xf32, #tpu.memory_space<vmem>>, %arg6: memref<32x32xf32, #tpu.memory_space<vmem>>, %arg7: memref<32x3xf32, #tpu.memory_space<vmem>>, %arg8: memref<32x96xf32, #tpu.memory_space<vmem>>, %arg9: memref<1x96xf32, #tpu.memory_space<vmem>>, %arg10: memref<3x32x4xf32, #tpu.memory_space<vmem>>, %arg11: memref<3x12xf32, #tpu.memory_space<vmem>>, %arg12: memref<1x1xf32, #tpu.memory_space<smem>>) attributes {dimension_semantics = [], scalar_prefetch = 0 : i64, scratch_operands = 0 : i64, tpu.core_type = #tpu.core_type<tc>} {
    %c0 = arith.constant 0 : index
    %c0_0 = arith.constant 0 : index
    %0 = vector.load %arg0[%c0, %c0_0] : memref<16x16xf32, #tpu.memory_space<vmem>>, vector<16x16xf32>
    %c0_1 = arith.constant 0 : index
    %c0_2 = arith.constant 0 : index
    %1 = vector.load %arg1[%c0_1, %c0_2] : memref<16x32xf32, #tpu.memory_space<vmem>>, vector<16x32xf32>
    %c0_3 = arith.constant 0 : index
    %c0_4 = arith.constant 0 : index
    %2 = vector.load %arg5[%c0_3, %c0_4] : memref<8x64xf32, #tpu.memory_space<vmem>>, vector<1x64xf32>
    %c1 = arith.constant 1 : index
    %c0_5 = arith.constant 0 : index
    %3 = vector.load %arg5[%c1, %c0_5] : memref<8x64xf32, #tpu.memory_space<vmem>>, vector<1x64xf32>
    %c0_6 = arith.constant 0 : index
    %c0_7 = arith.constant 0 : index
    %4 = vector.load %arg3[%c0_6, %c0_7] : memref<32x64xf32, #tpu.memory_space<vmem>>, vector<32x64xf32>
    %cst = arith.constant dense<0.000000e+00> : vector<16x64xf32>
    %5 = tpu.matmul %1, %4, %cst {dimension_numbers = #tpu.dot_dimension_numbers<[1], [0], [0], [1], [0, 0, 1, 1], [], []>} : vector<16x32xf32>, vector<32x64xf32>, vector<16x64xf32> -> vector<16x64xf32>
    %cst_8 = arith.constant dense<0.000000e+00> : vector<16x64xf32>
    %6 = tpu.matmul %0, %5, %cst_8 {dimension_numbers = #tpu.dot_dimension_numbers<[1], [0], [0], [1], [0, 0, 1, 1], [], []>} : vector<16x16xf32>, vector<16x64xf32>, vector<16x64xf32> -> vector<16x64xf32>
    %7 = vector.broadcast %2 : vector<1x64xf32> to vector<16x64xf32>
    %8 = arith.addf %6, %7 : vector<16x64xf32>
    %cst_9 = arith.constant 0.000000e+00 : f32
    %9 = vector.broadcast %cst_9 : f32 to vector<16x64xf32>
    %10 = arith.maximumf %8, %9 : vector<16x64xf32>
    %c0_10 = arith.constant 0 : index
    %c0_11 = arith.constant 0 : index
    %11 = vector.load %arg4[%c0_10, %c0_11] : memref<64x64xf32, #tpu.memory_space<vmem>>, vector<64x64xf32>
    %cst_12 = arith.constant dense<0.000000e+00> : vector<16x64xf32>
    %12 = tpu.matmul %10, %11, %cst_12 {dimension_numbers = #tpu.dot_dimension_numbers<[1], [0], [0], [1], [0, 0, 1, 1], [], []>} : vector<16x64xf32>, vector<64x64xf32>, vector<16x64xf32> -> vector<16x64xf32>
    %cst_13 = arith.constant dense<0.000000e+00> : vector<16x64xf32>
    %13 = tpu.matmul %0, %12, %cst_13 {dimension_numbers = #tpu.dot_dimension_numbers<[1], [0], [0], [1], [0, 0, 1, 1], [], []>} : vector<16x16xf32>, vector<16x64xf32>, vector<16x64xf32> -> vector<16x64xf32>
    %14 = vector.broadcast %3 : vector<1x64xf32> to vector<16x64xf32>
    %15 = arith.addf %13, %14 : vector<16x64xf32>
    %16 = vector.extract_strided_slice %15 {offsets = [0, 0], sizes = [16, 32], strides = [1, 1]} : vector<16x64xf32> to vector<16x32xf32>
    %17 = math.tanh %16 : vector<16x32xf32>
    %18 = vector.extract_strided_slice %15 {offsets = [0, 32], sizes = [16, 32], strides = [1, 1]} : vector<16x64xf32> to vector<16x32xf32>
    %c2 = arith.constant 2 : index
    %c0_14 = arith.constant 0 : index
    %19 = vector.load %arg5[%c2, %c0_14] : memref<8x64xf32, #tpu.memory_space<vmem>>, vector<1x32xf32>
    %c3 = arith.constant 3 : index
    %c0_15 = arith.constant 0 : index
    %20 = vector.load %arg5[%c3, %c0_15] : memref<8x64xf32, #tpu.memory_space<vmem>>, vector<1x3xf32>
    %c0_16 = arith.constant 0 : index
    %c0_17 = arith.constant 0 : index
    %21 = vector.load %arg6[%c0_16, %c0_17] : memref<32x32xf32, #tpu.memory_space<vmem>>, vector<32x32xf32>
    %cst_18 = arith.constant dense<0.000000e+00> : vector<16x32xf32>
    %22 = tpu.matmul %17, %21, %cst_18 {dimension_numbers = #tpu.dot_dimension_numbers<[1], [0], [0], [1], [0, 0, 1, 1], [], []>} : vector<16x32xf32>, vector<32x32xf32>, vector<16x32xf32> -> vector<16x32xf32>
    %23 = vector.broadcast %19 : vector<1x32xf32> to vector<16x32xf32>
    %24 = arith.addf %22, %23 : vector<16x32xf32>
    %cst_19 = arith.constant 0.000000e+00 : f32
    %25 = vector.broadcast %cst_19 : f32 to vector<16x32xf32>
    %26 = arith.maximumf %24, %25 : vector<16x32xf32>
    %c0_20 = arith.constant 0 : index
    %c0_21 = arith.constant 0 : index
    %27 = vector.load %arg7[%c0_20, %c0_21] : memref<32x3xf32, #tpu.memory_space<vmem>>, vector<32x3xf32>
    %cst_22 = arith.constant dense<0.000000e+00> : vector<16x3xf32>
    %28 = tpu.matmul %26, %27, %cst_22 {dimension_numbers = #tpu.dot_dimension_numbers<[1], [0], [0], [1], [0, 0, 1, 1], [], []>} : vector<16x32xf32>, vector<32x3xf32>, vector<16x3xf32> -> vector<16x3xf32>
    %29 = vector.broadcast %20 : vector<1x3xf32> to vector<16x3xf32>
    %30 = arith.addf %28, %29 : vector<16x3xf32>
    %cst_23 = arith.constant 0.000000e+00 : f32
    %31 = vector.broadcast %cst_23 : f32 to vector<16x3xf32>
    %32 = arith.maximumf %30, %31 : vector<16x3xf32>
    %cst_24 = arith.constant dense<0.000000e+00> : vector<3xf32>
    %33 = vector.multi_reduction <add>, %32, %cst_24 [0] : vector<16x3xf32> to vector<3xf32>
    %34 = vector.shape_cast %33 : vector<3xf32> to vector<1x3xf32>
    %35 = tpu.iota {dimensions = array<i32: 1>} : vector<16x4xi32>
    %c0_25 = arith.constant 0 : index
    %c0_26 = arith.constant 0 : index
    %36 = vector.load %arg2[%c0_25, %c0_26] : memref<16x1xi32, #tpu.memory_space<vmem>>, vector<16x1xi32>
    %37 = vector.broadcast %36 : vector<16x1xi32> to vector<16x4xi32>
    %38 = arith.cmpi eq, %35, %37 : vector<16x4xi32>
    %39 = arith.extui %38 : vector<16x4xi1> to vector<16x4xi32>
    %40 = arith.sitofp %39 : vector<16x4xi32> to vector<16x4xf32>
    %c0_27 = arith.constant 0 : index
    %c0_28 = arith.constant 0 : index
    %41 = vector.load %arg8[%c0_27, %c0_28] : memref<32x96xf32, #tpu.memory_space<vmem>>, vector<32x96xf32>
    %cst_29 = arith.constant dense<0.000000e+00> : vector<16x96xf32>
    %42 = tpu.matmul %18, %41, %cst_29 {dimension_numbers = #tpu.dot_dimension_numbers<[1], [0], [0], [1], [0, 0, 1, 1], [], []>} : vector<16x32xf32>, vector<32x96xf32>, vector<16x96xf32> -> vector<16x96xf32>
    %c0_30 = arith.constant 0 : index
    %c0_31 = arith.constant 0 : index
    %43 = vector.load %arg9[%c0_30, %c0_31] : memref<1x96xf32, #tpu.memory_space<vmem>>, vector<1x96xf32>
    %44 = vector.broadcast %43 : vector<1x96xf32> to vector<16x96xf32>
    %45 = arith.addf %42, %44 : vector<16x96xf32>
    %cst_32 = arith.constant 0.000000e+00 : f32
    %46 = vector.broadcast %cst_32 : f32 to vector<16x96xf32>
    %47 = arith.maximumf %45, %46 : vector<16x96xf32>
    %cst_33 = arith.constant 0.000000e+00 : f32
    %48 = vector.broadcast %cst_33 : f32 to vector<1x1xf32>
    %49 = vector.extract_strided_slice %47 {offsets = [0, 0], sizes = [16, 32], strides = [1, 1]} : vector<16x96xf32> to vector<16x32xf32>
    %c0_34 = arith.constant 0 : index
    %c0_35 = arith.constant 0 : index
    %c0_36 = arith.constant 0 : index
    %50 = vector.load %arg10[%c0_34, %c0_35, %c0_36] : memref<3x32x4xf32, #tpu.memory_space<vmem>>, vector<1x32x4xf32>
    %51 = vector.shape_cast %50 : vector<1x32x4xf32> to vector<32x4xf32>
    %cst_37 = arith.constant dense<0.000000e+00> : vector<16x4xf32>
    %52 = tpu.matmul %49, %51, %cst_37 {dimension_numbers = #tpu.dot_dimension_numbers<[1], [0], [0], [1], [0, 0, 1, 1], [], []>} : vector<16x32xf32>, vector<32x4xf32>, vector<16x4xf32> -> vector<16x4xf32>
    %c0_38 = arith.constant 0 : index
    %c0_39 = arith.constant 0 : index
    %53 = vector.load %arg11[%c0_38, %c0_39] : memref<3x12xf32, #tpu.memory_space<vmem>>, vector<1x4xf32>
    %54 = vector.broadcast %53 : vector<1x4xf32> to vector<16x4xf32>
    %55 = arith.addf %52, %54 : vector<16x4xf32>
    %cst_40 = arith.constant dense<0.000000e+00> : vector<16xf32>
    %56 = vector.multi_reduction <add>, %55, %cst_40 [1] : vector<16x4xf32> to vector<16xf32>
    %57 = vector.shape_cast %56 : vector<16xf32> to vector<16x1xf32>
    %cst_41 = arith.constant 4.000000e+00 : f32
    %58 = vector.broadcast %cst_41 : f32 to vector<16x1xf32>
    %59 = arith.divf %57, %58 : vector<16x1xf32>
    %60 = vector.broadcast %59 : vector<16x1xf32> to vector<16x4xf32>
    %61 = arith.subf %55, %60 : vector<16x4xf32>
    %62 = arith.mulf %61, %61 : vector<16x4xf32>
    %cst_42 = arith.constant dense<0.000000e+00> : vector<16xf32>
    %63 = vector.multi_reduction <add>, %62, %cst_42 [1] : vector<16x4xf32> to vector<16xf32>
    %64 = vector.shape_cast %63 : vector<16xf32> to vector<16x1xf32>
    %cst_43 = arith.constant 4.000000e+00 : f32
    %65 = vector.broadcast %cst_43 : f32 to vector<16x1xf32>
    %66 = arith.divf %64, %65 : vector<16x1xf32>
    %c0_44 = arith.constant 0 : index
    %c4 = arith.constant 4 : index
    %67 = vector.load %arg11[%c0_44, %c4] : memref<3x12xf32, #tpu.memory_space<vmem>>, vector<1x4xf32>
    %c0_45 = arith.constant 0 : index
    %c8 = arith.constant 8 : index
    %68 = vector.load %arg11[%c0_45, %c8] : memref<3x12xf32, #tpu.memory_space<vmem>>, vector<1x4xf32>
    %69 = vector.broadcast %59 : vector<16x1xf32> to vector<16x4xf32>
    %70 = arith.subf %55, %69 : vector<16x4xf32>
    %cst_46 = arith.constant 9.99999974E-6 : f32
    %71 = vector.broadcast %cst_46 : f32 to vector<16x1xf32>
    %72 = arith.addf %66, %71 : vector<16x1xf32>
    %73 = math.rsqrt %72 : vector<16x1xf32>
    %74 = vector.broadcast %73 : vector<16x1xf32> to vector<16x4xf32>
    %75 = arith.mulf %70, %74 : vector<16x4xf32>
    %76 = vector.broadcast %67 : vector<1x4xf32> to vector<16x4xf32>
    %77 = arith.mulf %75, %76 : vector<16x4xf32>
    %78 = vector.broadcast %68 : vector<1x4xf32> to vector<16x4xf32>
    %79 = arith.addf %77, %78 : vector<16x4xf32>
    %cst_47 = arith.constant dense<0xFF800000> : vector<16xf32>
    %80 = vector.multi_reduction <maximumf>, %79, %cst_47 [1] : vector<16x4xf32> to vector<16xf32>
    %81 = vector.shape_cast %80 : vector<16xf32> to vector<16x1xf32>
    %82 = vector.broadcast %81 : vector<16x1xf32> to vector<16x4xf32>
    %83 = arith.subf %79, %82 : vector<16x4xf32>
    %84 = math.exp %83 : vector<16x4xf32>
    %cst_48 = arith.constant dense<0.000000e+00> : vector<16xf32>
    %85 = vector.multi_reduction <add>, %84, %cst_48 [1] : vector<16x4xf32> to vector<16xf32>
    %86 = vector.shape_cast %85 : vector<16xf32> to vector<16x1xf32>
    %87 = math.log %86 : vector<16x1xf32>
    %88 = arith.addf %87, %81 : vector<16x1xf32>
    %89 = vector.broadcast %88 : vector<16x1xf32> to vector<16x4xf32>
    %90 = arith.subf %79, %89 : vector<16x4xf32>
    %91 = arith.mulf %90, %40 : vector<16x4xf32>
    %cst_49 = arith.constant dense<0.000000e+00> : vector<16xf32>
    %92 = vector.multi_reduction <add>, %91, %cst_49 [1] : vector<16x4xf32> to vector<16xf32>
    %93 = vector.shape_cast %92 : vector<16xf32> to vector<16x1xf32>
    %cst_50 = arith.constant 0.000000e+00 : f32
    %94 = vector.broadcast %cst_50 : f32 to vector<16x1xf32>
    %95 = arith.subf %94, %93 : vector<16x1xf32>
    %cst_51 = arith.constant dense<0.000000e+00> : vector<1xf32>
    %96 = vector.multi_reduction <add>, %95, %cst_51 [0] : vector<16x1xf32> to vector<1xf32>
    %97 = vector.shape_cast %96 : vector<1xf32> to vector<1x1xf32>
    %98 = vector.extract_strided_slice %34 {offsets = [0, 0], sizes = [1, 1], strides = [1, 1]} : vector<1x3xf32> to vector<1x1xf32>
    %99 = arith.mulf %97, %98 : vector<1x1xf32>
    %100 = arith.addf %48, %99 : vector<1x1xf32>
    %101 = vector.extract_strided_slice %47 {offsets = [0, 32], sizes = [16, 32], strides = [1, 1]} : vector<16x96xf32> to vector<16x32xf32>
    %c1_52 = arith.constant 1 : index
    %c0_53 = arith.constant 0 : index
    %c0_54 = arith.constant 0 : index
    %102 = vector.load %arg10[%c1_52, %c0_53, %c0_54] : memref<3x32x4xf32, #tpu.memory_space<vmem>>, vector<1x32x4xf32>
    %103 = vector.shape_cast %102 : vector<1x32x4xf32> to vector<32x4xf32>
    %cst_55 = arith.constant dense<0.000000e+00> : vector<16x4xf32>
    %104 = tpu.matmul %101, %103, %cst_55 {dimension_numbers = #tpu.dot_dimension_numbers<[1], [0], [0], [1], [0, 0, 1, 1], [], []>} : vector<16x32xf32>, vector<32x4xf32>, vector<16x4xf32> -> vector<16x4xf32>
    %c1_56 = arith.constant 1 : index
    %c0_57 = arith.constant 0 : index
    %105 = vector.load %arg11[%c1_56, %c0_57] : memref<3x12xf32, #tpu.memory_space<vmem>>, vector<1x4xf32>
    %106 = vector.broadcast %105 : vector<1x4xf32> to vector<16x4xf32>
    %107 = arith.addf %104, %106 : vector<16x4xf32>
    %cst_58 = arith.constant dense<0.000000e+00> : vector<16xf32>
    %108 = vector.multi_reduction <add>, %107, %cst_58 [1] : vector<16x4xf32> to vector<16xf32>
    %109 = vector.shape_cast %108 : vector<16xf32> to vector<16x1xf32>
    %cst_59 = arith.constant 4.000000e+00 : f32
    %110 = vector.broadcast %cst_59 : f32 to vector<16x1xf32>
    %111 = arith.divf %109, %110 : vector<16x1xf32>
    %112 = vector.broadcast %111 : vector<16x1xf32> to vector<16x4xf32>
    %113 = arith.subf %107, %112 : vector<16x4xf32>
    %114 = arith.mulf %113, %113 : vector<16x4xf32>
    %cst_60 = arith.constant dense<0.000000e+00> : vector<16xf32>
    %115 = vector.multi_reduction <add>, %114, %cst_60 [1] : vector<16x4xf32> to vector<16xf32>
    %116 = vector.shape_cast %115 : vector<16xf32> to vector<16x1xf32>
    %cst_61 = arith.constant 4.000000e+00 : f32
    %117 = vector.broadcast %cst_61 : f32 to vector<16x1xf32>
    %118 = arith.divf %116, %117 : vector<16x1xf32>
    %c1_62 = arith.constant 1 : index
    %c4_63 = arith.constant 4 : index
    %119 = vector.load %arg11[%c1_62, %c4_63] : memref<3x12xf32, #tpu.memory_space<vmem>>, vector<1x4xf32>
    %c1_64 = arith.constant 1 : index
    %c8_65 = arith.constant 8 : index
    %120 = vector.load %arg11[%c1_64, %c8_65] : memref<3x12xf32, #tpu.memory_space<vmem>>, vector<1x4xf32>
    %121 = vector.broadcast %111 : vector<16x1xf32> to vector<16x4xf32>
    %122 = arith.subf %107, %121 : vector<16x4xf32>
    %cst_66 = arith.constant 9.99999974E-6 : f32
    %123 = vector.broadcast %cst_66 : f32 to vector<16x1xf32>
    %124 = arith.addf %118, %123 : vector<16x1xf32>
    %125 = math.rsqrt %124 : vector<16x1xf32>
    %126 = vector.broadcast %125 : vector<16x1xf32> to vector<16x4xf32>
    %127 = arith.mulf %122, %126 : vector<16x4xf32>
    %128 = vector.broadcast %119 : vector<1x4xf32> to vector<16x4xf32>
    %129 = arith.mulf %127, %128 : vector<16x4xf32>
    %130 = vector.broadcast %120 : vector<1x4xf32> to vector<16x4xf32>
    %131 = arith.addf %129, %130 : vector<16x4xf32>
    %cst_67 = arith.constant dense<0xFF800000> : vector<16xf32>
    %132 = vector.multi_reduction <maximumf>, %131, %cst_67 [1] : vector<16x4xf32> to vector<16xf32>
    %133 = vector.shape_cast %132 : vector<16xf32> to vector<16x1xf32>
    %134 = vector.broadcast %133 : vector<16x1xf32> to vector<16x4xf32>
    %135 = arith.subf %131, %134 : vector<16x4xf32>
    %136 = math.exp %135 : vector<16x4xf32>
    %cst_68 = arith.constant dense<0.000000e+00> : vector<16xf32>
    %137 = vector.multi_reduction <add>, %136, %cst_68 [1] : vector<16x4xf32> to vector<16xf32>
    %138 = vector.shape_cast %137 : vector<16xf32> to vector<16x1xf32>
    %139 = math.log %138 : vector<16x1xf32>
    %140 = arith.addf %139, %133 : vector<16x1xf32>
    %141 = vector.broadcast %140 : vector<16x1xf32> to vector<16x4xf32>
    %142 = arith.subf %131, %141 : vector<16x4xf32>
    %143 = arith.mulf %142, %40 : vector<16x4xf32>
    %cst_69 = arith.constant dense<0.000000e+00> : vector<16xf32>
    %144 = vector.multi_reduction <add>, %143, %cst_69 [1] : vector<16x4xf32> to vector<16xf32>
    %145 = vector.shape_cast %144 : vector<16xf32> to vector<16x1xf32>
    %cst_70 = arith.constant 0.000000e+00 : f32
    %146 = vector.broadcast %cst_70 : f32 to vector<16x1xf32>
    %147 = arith.subf %146, %145 : vector<16x1xf32>
    %cst_71 = arith.constant dense<0.000000e+00> : vector<1xf32>
    %148 = vector.multi_reduction <add>, %147, %cst_71 [0] : vector<16x1xf32> to vector<1xf32>
    %149 = vector.shape_cast %148 : vector<1xf32> to vector<1x1xf32>
    %150 = vector.extract_strided_slice %34 {offsets = [0, 1], sizes = [1, 1], strides = [1, 1]} : vector<1x3xf32> to vector<1x1xf32>
    %151 = arith.mulf %149, %150 : vector<1x1xf32>
    %152 = arith.addf %100, %151 : vector<1x1xf32>
    %153 = vector.extract_strided_slice %47 {offsets = [0, 64], sizes = [16, 32], strides = [1, 1]} : vector<16x96xf32> to vector<16x32xf32>
    %c2_72 = arith.constant 2 : index
    %c0_73 = arith.constant 0 : index
    %c0_74 = arith.constant 0 : index
    %154 = vector.load %arg10[%c2_72, %c0_73, %c0_74] : memref<3x32x4xf32, #tpu.memory_space<vmem>>, vector<1x32x4xf32>
    %155 = vector.shape_cast %154 : vector<1x32x4xf32> to vector<32x4xf32>
    %cst_75 = arith.constant dense<0.000000e+00> : vector<16x4xf32>
    %156 = tpu.matmul %153, %155, %cst_75 {dimension_numbers = #tpu.dot_dimension_numbers<[1], [0], [0], [1], [0, 0, 1, 1], [], []>} : vector<16x32xf32>, vector<32x4xf32>, vector<16x4xf32> -> vector<16x4xf32>
    %c2_76 = arith.constant 2 : index
    %c0_77 = arith.constant 0 : index
    %157 = vector.load %arg11[%c2_76, %c0_77] : memref<3x12xf32, #tpu.memory_space<vmem>>, vector<1x4xf32>
    %158 = vector.broadcast %157 : vector<1x4xf32> to vector<16x4xf32>
    %159 = arith.addf %156, %158 : vector<16x4xf32>
    %cst_78 = arith.constant dense<0.000000e+00> : vector<16xf32>
    %160 = vector.multi_reduction <add>, %159, %cst_78 [1] : vector<16x4xf32> to vector<16xf32>
    %161 = vector.shape_cast %160 : vector<16xf32> to vector<16x1xf32>
    %cst_79 = arith.constant 4.000000e+00 : f32
    %162 = vector.broadcast %cst_79 : f32 to vector<16x1xf32>
    %163 = arith.divf %161, %162 : vector<16x1xf32>
    %164 = vector.broadcast %163 : vector<16x1xf32> to vector<16x4xf32>
    %165 = arith.subf %159, %164 : vector<16x4xf32>
    %166 = arith.mulf %165, %165 : vector<16x4xf32>
    %cst_80 = arith.constant dense<0.000000e+00> : vector<16xf32>
    %167 = vector.multi_reduction <add>, %166, %cst_80 [1] : vector<16x4xf32> to vector<16xf32>
    %168 = vector.shape_cast %167 : vector<16xf32> to vector<16x1xf32>
    %cst_81 = arith.constant 4.000000e+00 : f32
    %169 = vector.broadcast %cst_81 : f32 to vector<16x1xf32>
    %170 = arith.divf %168, %169 : vector<16x1xf32>
    %c2_82 = arith.constant 2 : index
    %c4_83 = arith.constant 4 : index
    %171 = vector.load %arg11[%c2_82, %c4_83] : memref<3x12xf32, #tpu.memory_space<vmem>>, vector<1x4xf32>
    %c2_84 = arith.constant 2 : index
    %c8_85 = arith.constant 8 : index
    %172 = vector.load %arg11[%c2_84, %c8_85] : memref<3x12xf32, #tpu.memory_space<vmem>>, vector<1x4xf32>
    %173 = vector.broadcast %163 : vector<16x1xf32> to vector<16x4xf32>
    %174 = arith.subf %159, %173 : vector<16x4xf32>
    %cst_86 = arith.constant 9.99999974E-6 : f32
    %175 = vector.broadcast %cst_86 : f32 to vector<16x1xf32>
    %176 = arith.addf %170, %175 : vector<16x1xf32>
    %177 = math.rsqrt %176 : vector<16x1xf32>
    %178 = vector.broadcast %177 : vector<16x1xf32> to vector<16x4xf32>
    %179 = arith.mulf %174, %178 : vector<16x4xf32>
    %180 = vector.broadcast %171 : vector<1x4xf32> to vector<16x4xf32>
    %181 = arith.mulf %179, %180 : vector<16x4xf32>
    %182 = vector.broadcast %172 : vector<1x4xf32> to vector<16x4xf32>
    %183 = arith.addf %181, %182 : vector<16x4xf32>
    %cst_87 = arith.constant dense<0xFF800000> : vector<16xf32>
    %184 = vector.multi_reduction <maximumf>, %183, %cst_87 [1] : vector<16x4xf32> to vector<16xf32>
    %185 = vector.shape_cast %184 : vector<16xf32> to vector<16x1xf32>
    %186 = vector.broadcast %185 : vector<16x1xf32> to vector<16x4xf32>
    %187 = arith.subf %183, %186 : vector<16x4xf32>
    %188 = math.exp %187 : vector<16x4xf32>
    %cst_88 = arith.constant dense<0.000000e+00> : vector<16xf32>
    %189 = vector.multi_reduction <add>, %188, %cst_88 [1] : vector<16x4xf32> to vector<16xf32>
    %190 = vector.shape_cast %189 : vector<16xf32> to vector<16x1xf32>
    %191 = math.log %190 : vector<16x1xf32>
    %192 = arith.addf %191, %185 : vector<16x1xf32>
    %193 = vector.broadcast %192 : vector<16x1xf32> to vector<16x4xf32>
    %194 = arith.subf %183, %193 : vector<16x4xf32>
    %195 = arith.mulf %194, %40 : vector<16x4xf32>
    %cst_89 = arith.constant dense<0.000000e+00> : vector<16xf32>
    %196 = vector.multi_reduction <add>, %195, %cst_89 [1] : vector<16x4xf32> to vector<16xf32>
    %197 = vector.shape_cast %196 : vector<16xf32> to vector<16x1xf32>
    %cst_90 = arith.constant 0.000000e+00 : f32
    %198 = vector.broadcast %cst_90 : f32 to vector<16x1xf32>
    %199 = arith.subf %198, %197 : vector<16x1xf32>
    %cst_91 = arith.constant dense<0.000000e+00> : vector<1xf32>
    %200 = vector.multi_reduction <add>, %199, %cst_91 [0] : vector<16x1xf32> to vector<1xf32>
    %201 = vector.shape_cast %200 : vector<1xf32> to vector<1x1xf32>
    %202 = vector.extract_strided_slice %34 {offsets = [0, 2], sizes = [1, 1], strides = [1, 1]} : vector<1x3xf32> to vector<1x1xf32>
    %203 = arith.mulf %201, %202 : vector<1x1xf32>
    %204 = arith.addf %152, %203 : vector<1x1xf32>
    %205 = vector.shape_cast %204 : vector<1x1xf32> to vector<1x1x1xf32>
    %cst_92 = arith.constant dense<0.000000e+00> : vector<1xf32>
    %206 = vector.multi_reduction <add>, %205, %cst_92 [1, 2] : vector<1x1x1xf32> to vector<1xf32>
    %207 = vector.shape_cast %206 : vector<1xf32> to vector<1x1x1xf32>
    %208 = vector.extract %207[0, 0, 0] : f32 from vector<1x1x1xf32>
    %cst_93 = arith.constant 0.00130208337 : f32
    %209 = arith.mulf %208, %cst_93 : f32
    %c0_94 = arith.constant 0 : index
    %c0_95 = arith.constant 0 : index
    %210 = memref.load %arg12[%c0_94, %c0_95] : memref<1x1xf32, #tpu.memory_space<smem>>
    memref.store %209, %arg12[%c0_94, %c0_95] : memref<1x1xf32, #tpu.memory_space<smem>>
    return
  }
}

</mosaic_0001>

<bundles_post_ra>
// kernel: model_forward_step1.1
= control target key start
LH: loop header
LB: loop body
LE: loop exit
PB: predicated region body
PF: predicated region fallthrough
CT: control target
= control target key end

     0   :  { %s1273_s0 = inlined_call_operand.vmem [shape: f32[16,16], index: 0, kind: input, shape index: {}]   ;;  %s1274_s1 = inlined_call_operand.vmem [shape: f32[16,32], index: 1, kind: input, shape index: {}]   ;;  %s1275_s2 = inlined_call_operand.vmem [shape: s32[16,1], index: 2, kind: input, shape index: {}]   ;;  %s1276_s3 = inlined_call_operand.vmem [shape: f32[32,64], index: 3, kind: input, shape index: {}]   ;;  %s1277_s4 = inlined_call_operand.vmem [shape: f32[64,64], index: 4, kind: input, shape index: {}]   ;;  %s1278_s5 = inlined_call_operand.vmem [shape: f32[8,64], index: 5, kind: input, shape index: {}]   ;;  %s1279_s6 = inlined_call_operand.vmem [shape: f32[32,32], index: 6, kind: input, shape index: {}]   ;;  %s1280_s7 = inlined_call_operand.vmem [shape: f32[32,3], index: 7, kind: input, shape index: {}]   ;;  %s1281_s8 = inlined_call_operand.vmem [shape: f32[32,96], index: 8, kind: input, shape index: {}]   ;;  %s1282_s9 = inlined_call_operand.vmem [shape: f32[1,96], index: 9, kind: input, shape index: {}]   ;;  %s1283_s10 = inlined_call_operand.vmem [shape: f32[3,32,4], index: 10, kind: input, shape index: {}]   ;;  %s1284_s11 = inlined_call_operand.vmem [shape: f32[3,12], index: 11, kind: input, shape index: {}]   ;;  %s1285_s12 = inlined_call_operand.hbm [shape: f32[1,1], index: 12, kind: output, shape index: {}]  }
   0x1   :  { %v51_v0 = vld [vmem:[%s1276_s3 + $0x18] sm:$0xff]  ;;  %v50_v1 = vld [vmem:[%s1276_s3 + $0x10] sm:$0xff]  ;;  %v49_v2 = vld [vmem:[%s1276_s3 + $0x8] sm:$0xff] }
   0x2   :  { %71 = vmatpush.msra.mxu0 %v51_v0  ;;  %v48_v3 = vld [vmem:[%s1276_s3] sm:$0xff] }
   0x4   :  { %72 = vmatpush.msra.mxu0 %v50_v1 }
   0x5   :  { %17 = vsyncpa [#allocation3], 0  ;;  %v44_v4 = vld [vmem:[%s1274_s1] sm:$0xff]  ;;  %vm52_vm0 = vcmask 261120   ;;  %v45_v5 = vld [vmem:[%s1274_s1 + $0x8] sm:$0xff]  ;;  %vm83_vm1 = vcmask 130048  }
   0x6   :  { %73 = vmatpush.msra.mxu0 %v49_v2  ;;  %v122_v6 = vld [vmem:[%s1277_s4 + $0x38] sm:$0xff]  ;;  %v121_v7 = vld [vmem:[%s1277_s4 + $0x30] sm:$0xff]  ;;  %v120_v8 = vld [vmem:[%s1277_s4 + $0x28] sm:$0xff]  ;;  %vm123_vm2 = vcmask 523264   ;;  %s880_s30 = smov 96   ;;  %s881_s27 = smov 64  }
   0x7   :  { %138 = vmatpush.msra.mxu2 %v122_v6  ;;  %v119_v9 = vld [vmem:[%s1277_s4 + $0x20] sm:$0xff]  ;;  %v118_v10 = vld [vmem:[%s1277_s4 + $0x18] sm:$0xff]  ;;  %v43_v14 = vld [vmem:[%s1273_s0 + $0x8] sm:$0xff]  ;;  %vm357_vm3 = vcmask 31744   ;;  %s884_s23 = smov 120  }
   0x8   :  { %74 = vmatpush.msra.mxu0 %v48_v3  ;;  %v42_v13 = vld [vmem:[%s1273_s0] sm:$0xff]  ;;  %v117_v15 = vld [vmem:[%s1277_s4 + $0x10] sm:$0xff]  ;;  %v116_v16 = vld [vmem:[%s1277_s4 + $0x8] sm:$0xff]  ;;  %s889_s0 = smov [#allocation2]  }
   0x9   :  { %769 = vmatmul.msk.f32.vlgmr.msra.gmra.mxu0 %vm52_vm0, %v44_v4  ;;  %139 = vmatpush.msra.mxu2 %v121_v7  ;;  %v115_v17 = vld [vmem:[%s1277_s4] sm:$0xff]  ;;  %v184_v27 = vld [vmem:[%s1279_s6 + $0x18] sm:$0xff]  ;;  %v183_v28 = vld [vmem:[%s1279_s6 + $0x10] sm:$0xff] }
   0xa   :  { %v816_v18 = vld [vmem:[%s1278_s5] ss:$0 sm:$0xff]  ;;  %v182_v29 = vld [vmem:[%s1279_s6 + $0x8] sm:$0xff]  ;;  %v282_v31 = vld [vmem:[%s1281_s8 + $0x18] sm:$0xff] }
   0xb   :  { %140 = vmatpush.msra.mxu2 %v120_v8  ;;  %v181_v30 = vld [vmem:[%s1279_s6] sm:$0xff]  ;;  %v281_v32 = vld [vmem:[%s1281_s8 + $0x10] sm:$0xff]  ;;  %v280_v33 = vld [vmem:[%s1281_s8 + $0x8] sm:$0xff]  ;;  %s888_s6 = smov 126  }
   0xc   :  { %v279_v34 = vld [vmem:[%s1281_s8] sm:$0xff]  ;;  %v220_v42 = vld [vmem:[%s1280_s7 + $0x18] sm:$0xff]  ;;  %v219_v43 = vld [vmem:[%s1280_s7 + $0x10] sm:$0xff]  ;;  %s759_s8 = sshll.u32 %s1285_s12, 4  ;;  %s760_s8 = int_to_ptr.hbm [resolvable:$true] %s759_s8 }
   0xd   :  { %141 = vmatpush.msra.mxu2 %v119_v9  ;;  %v817_v35 = vld [vmem:[%s1278_s5 + $0x1] ss:$0 sm:$0xff]  ;;  %v218_v44 = vld [vmem:[%s1280_s7 + $0x8] sm:$0xff]  ;;  %v818_v48 = vld [vmem:[%s1278_s5 + $0x2] ss:$0 sm:$0xff] }
   0xe   :  { %v217_v45 = vld [vmem:[%s1280_s7] sm:$0xff]  ;;  %v325_v55 = vld [vmem:[%s1283_s10 + $0x18] sm:$0xff]  ;;  %v324_v56 = vld [vmem:[%s1283_s10 + $0x10] sm:$0xff] }
   0xf   :  { %142 = vmatpush.msra.mxu2 %v118_v10  ;;  %v323_v57 = vld [vmem:[%s1283_s10 + $0x8] sm:$0xff]  ;;  %v322_v58 = vld [vmem:[%s1283_s10] sm:$0xff]  ;;  %v796_v2 = vld [vmem:[%s1283_s10 + $0x58] sm:$0xff] }
  0x10   :  { %v819_v59 = vld [vmem:[%s1282_s9] ss:$0 sm:$0xff]  ;;  %v795_v3 = vld [vmem:[%s1283_s10 + $0x50] sm:$0xff]  ;;  %v794_v4 = vld [vmem:[%s1283_s10 + $0x48] sm:$0xff] }
  0x11   :  { %770 = vmatmul.msk.f32.gmra.mxu0 %vm52_vm0, %v45_v5  ;;  %143 = vmatpush.msra.mxu2 %v117_v15  ;;  %v793_v5 = vld [vmem:[%s1283_s10 + $0x40] sm:$0xff]  ;;  %v790_v6 = vld [vmem:[%s1283_s10 + $0x38] sm:$0xff]  ;;  %v789_v7 = vld [vmem:[%s1283_s10 + $0x30] sm:$0xff] }
  0x12   :  { %v788_v8 = vld [vmem:[%s1283_s10 + $0x28] sm:$0xff]  ;;  %v787_v9 = vld [vmem:[%s1283_s10 + $0x20] sm:$0xff] }
  0x13   :  { %144 = vmatpush.msra.mxu2 %v116_v16  ;;  %v822_v16 = vld [vmem:[%s1284_s11 + $0x2] ss:$0 sm:$0xff] }
  0x15   :  { %145 = vmatpush.msra.mxu2 %v115_v17  ;;  %v823_v17 = vld [vmem:[%s1284_s11 + $0x1] ss:$0 sm:$0xff] }
  0x17   :  { %346 = vmatpush.msrb.mxu2 %v325_v55 }
  0x19   :  { %347 = vmatpush.msrb.mxu2 %v324_v56 }
  0x1b   :  { %348 = vmatpush.msrb.mxu2 %v323_v57 }
  0x1d   :  { %349 = vmatpush.msrb.mxu2 %v322_v58 }
  0x86   :  { %v76_v11 = vpop.f32.mrf.mxu0 }
  0x8e   :  { %v79_v12 = vpop.f32.mrf.mxu0 }
  0x8f   :  { %104 = vmatpush.msrb.mxu0 %v79_v12  ;;  %799 = vmatpush.msra.mxu1 %v79_v12 }
  0x91   :  { %105 = vmatpush.msrb.mxu0 %v76_v11  ;;  %800 = vmatpush.msra.mxu1 %v76_v11 }
  0x92   :  { %771 = vmatmul.msk.f32.vlgmr.msrb.gmra.mxu0 %vm83_vm1, %v42_v13  ;;  %772 = vmatmul.msk.f32.vlgmr.msra.gmra.mxu1 %vm83_vm1, %v43_v14 }
  0x93   :  { %204 = vmatpush.msrb.mxu1 %v184_v27  ;;  %309 = vmatpush.msra.mxu0 %v282_v31 }
  0x95   :  { %205 = vmatpush.msrb.mxu1 %v183_v28  ;;  %310 = vmatpush.msra.mxu0 %v281_v32 }
  0x97   :  { %206 = vmatpush.msrb.mxu1 %v182_v29  ;;  %311 = vmatpush.msra.mxu0 %v280_v33 }
  0x99   :  { %207 = vmatpush.msrb.mxu1 %v181_v30  ;;  %312 = vmatpush.msra.mxu0 %v279_v34 }
  0x9b   :  { %492 = vmatpush.msra.mxu1 %v790_v6 }
  0x9d   :  { %493 = vmatpush.msra.mxu1 %v789_v7 }
  0x9f   :  { %494 = vmatpush.msra.mxu1 %v788_v8 }
  0xa1   :  { %495 = vmatpush.msra.mxu1 %v787_v9 }
 0x10f   :  { %v107_v19 = vpop.f32.mrf.mxu0  ;;  %v110_v21 = vpop.f32.mrf.mxu1 }
 0x110   :  { %v108_v20 = vadd.f32 %v816_v18, %v107_v19  ;;  %v111_v23 = vadd.f32 %v816_v18, %v110_v21 }
 0x112   :  { %v113_v22 = vmax.f32 %v108_v20, 0.0  ;;  %v114_v24 = vmax.f32 %v111_v23, 0.0  ;;  %v1123_v23 = vld [vmem:[%s1284_s11] ss:$0 sm:$0xff]  ;;  %s882_s11 = smov 124  }
 0x114   :  { %773 = vmatmul.msk.f32.vlgmr.msra.gmra.mxu2 %vm123_vm2, %v113_v22 }
 0x11c   :  { %774 = vmatmul.msk.f32.gmra.mxu2 %vm123_vm2, %v114_v24 }
 0x197   :  { %v147_v25 = vpop.f32.mrf.mxu2 }
 0x19f   :  { %v150_v26 = vpop.f32.mrf.mxu2 }
 0x1a0   :  { %168 = vmatpush.msra.mxu3 %v150_v26 }
 0x1a2   :  { %169 = vmatpush.msra.mxu3 %v147_v25 }
 0x1a3   :  { %775 = vmatmul.msk.f32.vlgmr.msra.gmra.mxu3 %vm83_vm1, %v42_v13 }
 0x1a4   :  { %240 = vmatpush.msrb.mxu3 %v220_v42 }
 0x1a6   :  { %241 = vmatpush.msrb.mxu3 %v219_v43 }
 0x1a8   :  { %242 = vmatpush.msrb.mxu3 %v218_v44 }
 0x1aa   :  { %243 = vmatpush.msrb.mxu3 %v217_v45 }
 0x1ab   :  { %776 = vmatmul.msk.f32.gmra.mxu3 %vm83_vm1, %v43_v14 }
 0x1ac   :  { %634 = vmatpush.msra.mxu3 %v796_v2 }
 0x1ae   :  { %635 = vmatpush.msra.mxu3 %v795_v3 }
 0x1b0   :  { %636 = vmatpush.msra.mxu3 %v794_v4 }
 0x1b2   :  { %637 = vmatpush.msra.mxu3 %v793_v5 }
 0x226   :  { %v171_v36 = vpop.f32.mrf.mxu3 }
 0x227   :  { %v172_v37 = vadd.f32 %v817_v35, %v171_v36 }
 0x229   :  { %824 = vtanh.f32 %v172_v37  ;;  %289 = vrot.lane.b32.xlu0 %v172_v37, %s880_s30  ;;  %v883_v37 = vmov 4.0  }
 0x22e   :  { %v174_v38 = vpop.f32.mrf.mxu3 }
 0x22f   :  { %v825_v39 = vpop.eup %824  ;;  %v175_v40 = vadd.f32 %v817_v35, %v174_v38 }
 0x230   :  { %777 = vmatmul.msk.f32.vlgmr.msrb.gmra.mxu1 %vm52_vm0, %v825_v39 }
 0x231   :  { %826 = vtanh.f32 %v175_v40  ;;  %291 = vrot.lane.b32.xlu0 %v175_v40, %s880_s30 }
 0x232   :  { %828 = vrcp.f32 %v883_v37 }
 0x237   :  { %v827_v41 = vpop.eup %826 }
 0x238   :  { %778 = vmatmul.msk.f32.gmra.mxu1 %vm52_vm0, %v827_v41  ;;  %v829_v38 = vpop.eup %828 }
 0x239   :  { %v365_v39 = vmul.f32 4.0, %v829_v38  ;;  %vm369_vm4 = vweird.f32 %v829_v38 }
 0x23b   :  { %v366_v40 = vsub.f32 1.0, %v365_v39 }
 0x23d   :  { %v367_v41 = vmul.f32 %v829_v38, %v366_v40 }
 0x23f   :  { %v368_v42 = vadd.f32 %v829_v38, %v367_v41 }
 0x241   :  { %v1133_v43 = vsel %vm369_vm4, %v829_v38, %v368_v42 }
 0x29b   :  { %v290_v46 = vpop.permute.xlu0 %289 }
 0x29c   :  { %783 = vmatmul.msk.f32.vlgmr.msra.gmra.mxu0 %vm52_vm0, %v290_v46 }
 0x2a3   :  { %v292_v47 = vpop.permute.xlu0 %291 }
 0x2a4   :  { %784 = vmatmul.msk.f32.gmra.mxu0 %vm52_vm0, %v292_v47 }
 0x2ad   :  { %v209_v49 = vpop.f32.mrf.mxu1 }
 0x2ae   :  { %v210_v50 = vadd.f32 %v818_v48, %v209_v49 }
 0x2b0   :  { %v215_v51 = vmax.f32 %v210_v50, 0.0 }
 0x2b2   :  { %779 = vmatmul.msk.f32.vlgmr.msrb.gmra.mxu3 %vm52_vm0, %v215_v51 }
 0x2b5   :  { %v212_v52 = vpop.f32.mrf.mxu1 }
 0x2b6   :  { %v213_v53 = vadd.f32 %v818_v48, %v212_v52 }
 0x2b8   :  { %v216_v54 = vmax.f32 %v213_v53, 0.0 }
 0x2ba   :  { %780 = vmatmul.msk.f32.gmra.mxu3 %vm52_vm0, %v216_v54 }
 0x319   :  { %v314_v60 = vpop.f32.mrf.mxu0 }
 0x31a   :  { %v315_v61 = vadd.f32 %v819_v59, %v314_v60 }
 0x31c   :  { %v320_v62 = vmax.f32 %v315_v61, 0.0 }
 0x31e   :  { %614 = vrot.lane.b32.xlu1 %v320_v62, %s881_s27  ;;  %785 = vmatmul.msk.f32.vlgmr.msrb.gmra.mxu2 %vm52_vm0, %v320_v62 }
 0x321   :  { %v317_v63 = vpop.f32.mrf.mxu0 }
 0x322   :  { %v318_v0 = vadd.f32 %v819_v59, %v317_v63 }
 0x324   :  { %v321_v1 = vmax.f32 %v318_v0, 0.0 }
 0x326   :  { %472 = vrot.lane.b32.xlu1 %v320_v62, %s880_s30  ;;  %616 = vrot.lane.b32.xlu2 %v321_v1, %s881_s27 }
 0x327   :  { %786 = vmatmul.msk.f32.gmra.mxu2 %vm52_vm0, %v321_v1 }
 0x32e   :  { %474 = vrot.lane.b32.xlu2 %v321_v1, %s880_s30 }
 0x335   :  { %v1109_v14 = vpop.f32.mrf.mxu3 }
 0x33d   :  { %v1111_v15 = vpop.f32.mrf.mxu3 }
 0x380   :  { %v617_v11 = vpop.permute.xlu2 %616 }
 0x388   :  { %v475_v13 = vpop.permute.xlu2 %474 }
 0x390   :  { %v615_v10 = vpop.permute.xlu1 %614 }
 0x391   :  { %797 = vmatmul.msk.f32.vlgmr.msra.gmra.mxu3 %vm52_vm0, %v615_v10 }
 0x398   :  { %v473_v12 = vpop.permute.xlu1 %472 }
 0x399   :  { %791 = vmatmul.msk.f32.vlgmr.msra.gmra.mxu1 %vm52_vm0, %v473_v12  ;;  %798 = vmatmul.msk.f32.gmra.mxu3 %vm52_vm0, %v617_v11 }
 0x3a1   :  { %792 = vmatmul.msk.f32.gmra.mxu1 %vm52_vm0, %v475_v13  ;;  %v351_v25 = vpop.f32.mrf.mxu2 }
 0x3a2   :  { %v352_v27 = vadd.f32 %v1123_v23, %v351_v25 }
 0x3a4   :  { %v358_v33 = vsel %vm357_vm3, %v352_v27, 0.0 }
 0x3aa   :  { %v354_v34 = vpop.f32.mrf.mxu2 }
 0x3ab   :  { %v355_v35 = vadd.f32 %v1123_v23, %v354_v34 }
 0x3ad   :  { %v361_v36 = vsel %vm357_vm3, %v355_v35, 0.0 }
 0x414   :  { %v639_v18 = vpop.f32.mrf.mxu3 }
 0x415   :  { %v640_v19 = vadd.f32 %v822_v16, %v639_v18 }
 0x416   :  { %v497_v20 = vpop.f32.mrf.mxu1 }
 0x417   :  { %v498_v21 = vadd.f32 %v823_v17, %v497_v20  ;;  %v645_v22 = vsel %vm357_vm3, %v640_v19, 0.0 }
 0x418   :  { %646 = vadd.xlane.f32.xlu2 %v645_v22 }
 0x419   :  { %v503_v24 = vsel %vm357_vm3, %v498_v21, 0.0 }
 0x41a   :  { %504 = vadd.xlane.f32.xlu0 %v503_v24 }
 0x41c   :  { %v642_v26 = vpop.f32.mrf.mxu3 }
 0x41d   :  { %v643_v28 = vadd.f32 %v822_v16, %v642_v26 }
 0x41e   :  { %v500_v29 = vpop.f32.mrf.mxu1 }
 0x41f   :  { %v501_v30 = vadd.f32 %v823_v17, %v500_v29  ;;  %v648_v31 = vsel %vm357_vm3, %v643_v28, 0.0 }
 0x420   :  { %649 = vadd.xlane.f32.xlu2 %v648_v31 }
 0x421   :  { %v506_v32 = vsel %vm357_vm3, %v501_v30, 0.0 }
 0x422   :  { %507 = vadd.xlane.f32.xlu1 %v506_v32  ;;  %359 = vadd.xlane.f32.xlu0 %v358_v33 }
 0x42a   :  { %362 = vadd.xlane.f32.xlu1 %v361_v36 }
 0x436   :  { %548 = vrot.lane.b32.xlu0 %v823_v17, %s882_s11 }
 0x48b   :  { %v647_v44 = vpop.xlane.xlu2 %646 }
 0x48c   :  { %v651_v45 = vmul.f32 %v647_v44, %v1133_v43 }
 0x48d   :  { %v505_v46 = vpop.xlane.xlu0 %504 }
 0x48e   :  { %v1136_v47 = vsub.f32 %v640_v19, %v651_v45  ;;  %v509_v48 = vmul.f32 %v505_v46, %v1133_v43 }
 0x490   :  { %v1139_v49 = vsub.f32 %v498_v21, %v509_v48  ;;  %v655_v50 = vmul.f32 %v1136_v47, %v1136_v47 }
 0x492   :  { %v657_v51 = vsel %vm357_vm3, %v655_v50, 0.0  ;;  %v513_v52 = vmul.f32 %v1139_v49, %v1139_v49 }
 0x493   :  { %658 = vadd.xlane.f32.xlu1 %v657_v51  ;;  %v650_v59 = vpop.xlane.xlu2 %649 }
 0x494   :  { %v515_v53 = vsel %vm357_vm3, %v513_v52, 0.0  ;;  %v652_v61 = vmul.f32 %v650_v59, %v1133_v43 }
 0x495   :  { %v508_v54 = vpop.xlane.xlu1 %507  ;;  %516 = vadd.xlane.f32.xlu2 %v515_v53  ;;  %v360_v60 = vpop.xlane.xlu0 %359 }
 0x496   :  { %v510_v55 = vmul.f32 %v508_v54, %v1133_v43  ;;  %v371_v62 = vmul.f32 %v1133_v43, %v360_v60  ;;  %v1156_v0 = vsub.f32 %v643_v28, %v652_v61 }
 0x498   :  { %v1148_v56 = vsub.f32 %v501_v30, %v510_v55  ;;  %v1158_v1 = vsub.f32 %v352_v27, %v371_v62  ;;  %v656_v4 = vmul.f32 %v1156_v0, %v1156_v0 }
 0x49a   :  { %v514_v57 = vmul.f32 %v1148_v56, %v1148_v56  ;;  %v375_v3 = vmul.f32 %v1158_v1, %v1158_v1  ;;  %v660_v7 = vsel %vm357_vm3, %v656_v4, 0.0 }
 0x49c   :  { %v518_v58 = vsel %vm357_vm3, %v514_v57, 0.0  ;;  %v377_v6 = vsel %vm357_vm3, %v375_v3, 0.0 }
 0x49d   :  { %519 = vadd.xlane.f32.xlu0 %v518_v58  ;;  %v363_v63 = vpop.xlane.xlu1 %362 }
 0x49e   :  { %v372_v2 = vmul.f32 %v1133_v43, %v363_v63 }
 0x4a0   :  { %v1165_v5 = vsub.f32 %v355_v35, %v372_v2 }
 0x4a2   :  { %v376_v8 = vmul.f32 %v1165_v5, %v1165_v5 }
 0x4a4   :  { %v380_v9 = vsel %vm357_vm3, %v376_v8, 0.0 }
 0x4a8   :  { %v549_v12 = vpop.permute.xlu0 %548 }
 0x4ac   :  { %553 = vrot.lane.b32.xlu1 %v823_v17, %s884_s23 }
 0x4ad   :  { %690 = vrot.lane.b32.xlu2 %v822_v16, %s882_s11 }
 0x4b1   :  { %695 = vrot.lane.b32.xlu0 %v822_v16, %s884_s23 }
 0x4d6   :  { %378 = vadd.xlane.f32.xlu1 %v377_v6  ;;  %661 = vadd.xlane.f32.xlu2 %v660_v7 }
 0x4db   :  { %381 = vadd.xlane.f32.xlu0 %v380_v9 }
 0x4ee   :  { %410 = vrot.lane.b32.xlu2 %v1123_v23, %s882_s11 }
 0x4f6   :  { %415 = vrot.lane.b32.xlu2 %v1123_v23, %s884_s23 }
 0x506   :  { %v659_v10 = vpop.xlane.xlu1 %658 }
 0x507   :  { %v663_v11 = vmul.f32 %v659_v10, %v1133_v43 }
 0x508   :  { %v517_v13 = vpop.xlane.xlu2 %516 }
 0x509   :  { %v665_v16 = vadd.f32 1e-05, %v663_v11  ;;  %v521_v17 = vmul.f32 %v517_v13, %v1133_v43 }
 0x50b   :  { %830 = vrsqrt.f32 %v665_v16  ;;  %v523_v18 = vadd.f32 1e-05, %v521_v17  ;;  %vm673_vm6 = vweird.f32 %v665_v16 }
 0x50d   :  { %832 = vrsqrt.f32 %v523_v18  ;;  %vm531_vm9 = vweird.f32 %v523_v18 }
 0x510   :  { %v520_v19 = vpop.xlane.xlu0 %519  ;;  %v1180_v44 = vpop.permute.xlu2 %690 }
 0x511   :  { %v831_v20 = vpop.eup %830  ;;  %v522_v21 = vmul.f32 %v520_v19, %v1133_v43 }
 0x512   :  { %v668_v22 = vmul.f32 %v831_v20, %v665_v16  ;;  %vm674_vm5 = vweird.f32 %v831_v20 }
 0x513   :  { %v833_v24 = vpop.eup %832  ;;  %v524_v25 = vadd.f32 1e-05, %v522_v21  ;;  %vm675_vm8 = vmor %vm673_vm6, %vm674_vm5 }
 0x514   :  { %v669_v26 = vmul.f32 %v831_v20, %v668_v22  ;;  %v526_v23 = vmul.f32 %v833_v24, %v523_v18  ;;  %vm532_vm7 = vweird.f32 %v833_v24 }
 0x515   :  { %834 = vrsqrt.f32 %v524_v25  ;;  %vm533_vm10 = vmor %vm531_vm9, %vm532_vm7  ;;  %vm541_vm12 = vweird.f32 %v524_v25 }
 0x516   :  { %v670_v27 = vmul.f32 0.5, %v669_v26  ;;  %v527_v28 = vmul.f32 %v833_v24, %v526_v23 }
 0x518   :  { %v671_v29 = vsub.f32 1.5, %v670_v27  ;;  %v528_v30 = vmul.f32 0.5, %v527_v28 }
 0x51a   :  { %v529_v31 = vsub.f32 1.5, %v528_v30  ;;  %v672_v32 = vmul.f32 %v831_v20, %v671_v29 }
 0x51b   :  { %v835_v33 = vpop.eup %834 }
 0x51c   :  { %v530_v34 = vmul.f32 %v833_v24, %v529_v31  ;;  %v536_v35 = vmul.f32 %v835_v33, %v524_v25  ;;  %v676_v36 = vsel %vm675_vm8, %v831_v20, %v672_v32  ;;  %vm542_vm11 = vweird.f32 %v835_v33 }
 0x51d   :  { %v687_v38 = vmul.f32 %v676_v36, %v1136_v47  ;;  %vm543_vm13 = vmor %vm541_vm12, %vm542_vm11 }
 0x51e   :  { %v537_v37 = vmul.f32 %v835_v33, %v536_v35  ;;  %v534_v39 = vsel %vm533_vm10, %v833_v24, %v530_v34  ;;  %v554_v42 = vpop.permute.xlu1 %553  ;;  %vm253_vm10 = vcmask 23552  }
 0x51f   :  { %v545_v40 = vmul.f32 %v534_v39, %v1139_v49  ;;  %v693_v48 = vmul.f32 %v1180_v44, %v687_v38 }
 0x520   :  { %v538_v41 = vmul.f32 0.5, %v537_v37 }
 0x521   :  { %v551_v45 = vmul.f32 %v549_v12, %v545_v40 }
 0x522   :  { %v539_v46 = vsub.f32 1.5, %v538_v41  ;;  %v885_v41 = vmov 0  }
 0x523   :  { %v1183_v50 = vadd.f32 %v554_v42, %v551_v45  ;;  %v1185_v51 = vpop.permute.xlu0 %695  ;;  %814 = vset.pattern.permute.xlu1 %v885_v41  ;;  %813 = vset.pattern.permute.xlu2 %v885_v41 }
 0x524   :  { %v540_v52 = vmul.f32 %v835_v33, %v539_v46  ;;  %v1188_v47 = vadd.f32 %v1185_v51, %v693_v48  ;;  %815 = vset.pattern.permute.xlu0 %v885_v41 }
 0x525   :  { %v558_v49 = vsel %vm357_vm3, %v1183_v50, -inf }
 0x526   :  { %v544_v53 = vsel %vm543_vm13, %v835_v33, %v540_v52  ;;  %559 = vmax.xlane.f32.xlu2 %v558_v49  ;;  %v700_v54 = vsel %vm357_vm3, %v1188_v47, -inf }
 0x527   :  { %v546_v55 = vmul.f32 %v544_v53, %v1148_v56  ;;  %701 = vmax.xlane.f32.xlu0 %v700_v54 }
 0x529   :  { %v552_v57 = vmul.f32 %v549_v12, %v546_v55 }
 0x52b   :  { %v1195_v58 = vadd.f32 %v554_v42, %v552_v57 }
 0x52d   :  { %v561_v59 = vsel %vm357_vm3, %v1195_v58, -inf }
 0x52e   :  { %562 = vmax.xlane.f32.xlu1 %v561_v59 }
 0x549   :  { %v379_v60 = vpop.xlane.xlu1 %378  ;;  %v662_v61 = vpop.xlane.xlu2 %661 }
 0x54a   :  { %v383_v62 = vmul.f32 %v379_v60, %v1133_v43  ;;  %v664_v63 = vmul.f32 %v662_v61, %v1133_v43  ;;  %v266_v61 = vld [vmem:[%s1275_s2 + $0x8] sm:$0xff] }
 0x54c   :  { %v385_v2 = vadd.f32 1e-05, %v383_v62  ;;  %v666_v3 = vadd.f32 1e-05, %v664_v63  ;;  %v265_v62 = vld [vmem:[%s1275_s2] sm:$0xff] }
 0x54e   :  { %836 = vrsqrt.f32 %v385_v2  ;;  %v382_v4 = vpop.xlane.xlu0 %381  ;;  %vm393_vm0 = vweird.f32 %v385_v2  ;;  %vm683_vm2 = vweird.f32 %v666_v3 }
 0x54f   :  { %838 = vrsqrt.f32 %v666_v3  ;;  %v384_v56 = vmul.f32 %v382_v4, %v1133_v43 }
 0x551   :  { %v386_v6 = vadd.f32 1e-05, %v384_v56  ;;  %v411_v12 = vpop.permute.xlu2 %410 }
 0x553   :  { %840 = vrsqrt.f32 %v386_v6  ;;  %vm403_vm6 = vweird.f32 %v386_v6 }
 0x554   :  { %v837_v7 = vpop.eup %836 }
 0x555   :  { %v839_v8 = vpop.eup %838  ;;  %v388_v9 = vmul.f32 %v837_v7, %v385_v2  ;;  %vm394_vm14 = vweird.f32 %v837_v7 }
 0x556   :  { %v678_v10 = vmul.f32 %v839_v8, %v666_v3  ;;  %vm684_vm15 = vweird.f32 %v839_v8  ;;  %vm395_vm1 = vmor %vm393_vm0, %vm394_vm14 }
 0x557   :  { %v389_v11 = vmul.f32 %v837_v7, %v388_v9  ;;  %vm685_vm4 = vmor %vm683_vm2, %vm684_vm15 }
 0x558   :  { %v679_v13 = vmul.f32 %v839_v8, %v678_v10 }
 0x559   :  { %v841_v16 = vpop.eup %840  ;;  %v390_v17 = vmul.f32 0.5, %v389_v11  ;;  %v416_v29 = vpop.permute.xlu2 %415 }
 0x55a   :  { %v680_v18 = vmul.f32 0.5, %v679_v13  ;;  %v398_v19 = vmul.f32 %v841_v16, %v386_v6  ;;  %vm404_vm5 = vweird.f32 %v841_v16 }
 0x55b   :  { %v391_v20 = vsub.f32 1.5, %v390_v17  ;;  %vm405_vm7 = vmor %vm403_vm6, %vm404_vm5 }
 0x55c   :  { %v681_v21 = vsub.f32 1.5, %v680_v18  ;;  %v399_v22 = vmul.f32 %v841_v16, %v398_v19 }
 0x55d   :  { %v392_v43 = vmul.f32 %v837_v7, %v391_v20 }
 0x55e   :  { %v682_v24 = vmul.f32 %v839_v8, %v681_v21  ;;  %v400_v25 = vmul.f32 0.5, %v399_v22 }
 0x55f   :  { %v396_v26 = vsel %vm395_vm1, %v837_v7, %v392_v43 }
 0x560   :  { %v686_v23 = vsel %vm685_vm4, %v839_v8, %v682_v24  ;;  %v401_v27 = vsub.f32 1.5, %v400_v25  ;;  %v407_v28 = vmul.f32 %v396_v26, %v1158_v1  ;;  %v263_v25 = vlaneseq }
 0x561   :  { %v688_v30 = vmul.f32 %v686_v23, %v1156_v0 }
 0x562   :  { %v402_v31 = vmul.f32 %v841_v16, %v401_v27  ;;  %v413_v32 = vmul.f32 %v411_v12, %v407_v28  ;;  %v264_v27 = vand.u32 127, %v263_v25 }
 0x563   :  { %v694_v33 = vmul.f32 %v1180_v44, %v688_v30 }
 0x564   :  { %v406_v34 = vsel %vm405_vm7, %v841_v16, %v402_v31  ;;  %v1205_v35 = vadd.f32 %v416_v29, %v413_v32 }
 0x565   :  { %v408_v36 = vmul.f32 %v406_v34, %v1165_v5  ;;  %v1209_v37 = vadd.f32 %v1185_v51, %v694_v33  ;;  %v886_v33 = vmov 0.0  }
 0x566   :  { %v420_v1 = vsel %vm357_vm3, %v1205_v35, -inf }
 0x567   :  { %v414_v38 = vmul.f32 %v411_v12, %v408_v36  ;;  %v703_v0 = vsel %vm357_vm3, %v1209_v37, -inf  ;;  %421 = vmax.xlane.f32.xlu0 %v420_v1 }
 0x568   :  { %704 = vmax.xlane.f32.xlu1 %v703_v0 }
 0x569   :  { %v1215_v39 = vadd.f32 %v416_v29, %v414_v38 }
 0x56b   :  { %v423_v40 = vsel %vm357_vm3, %v1215_v39, -inf }
 0x570   :  { %424 = vmax.xlane.f32.xlu1 %v423_v40 }
 0x599   :  { %v560_v5 = vpop.xlane.xlu2 %559 }
 0x59a   :  { %v564_v42 = vsub.f32 %v1183_v50, %v560_v5  ;;  %v702_v44 = vpop.xlane.xlu0 %701 }
 0x59b   :  { %v706_v45 = vsub.f32 %v1188_v47, %v702_v44 }
 0x59c   :  { %v566_v46 = vmul.f32 1.442695, %v564_v42 }
 0x59d   :  { %v708_v48 = vmul.f32 1.442695, %v706_v45 }
 0x59e   :  { %842 = vpow2.f32 %v566_v46 }
 0x59f   :  { %844 = vpow2.f32 %v708_v48 }
 0x5a1   :  { %v1221_v51 = vpop.xlane.xlu1 %562 }
 0x5a2   :  { %v565_v52 = vsub.f32 %v1195_v58, %v1221_v51 }
 0x5a4   :  { %v843_v49 = vpop.eup %842  ;;  %v568_v53 = vmul.f32 1.442695, %v565_v52 }
 0x5a5   :  { %v845_v54 = vpop.eup %844  ;;  %v570_v55 = vsel %vm357_vm3, %v843_v49, 0.0 }
 0x5a6   :  { %846 = vpow2.f32 %v568_v53  ;;  %571 = vadd.xlane.f32.xlu0 %v570_v55  ;;  %v712_v57 = vsel %vm357_vm3, %v845_v54, 0.0 }
 0x5a7   :  { %713 = vadd.xlane.f32.xlu1 %v712_v57 }
 0x5ac   :  { %v847_v59 = vpop.eup %846 }
 0x5ad   :  { %v573_v60 = vsel %vm357_vm3, %v847_v59, 0.0 }
 0x5ae   :  { %574 = vadd.xlane.f32.xlu2 %v573_v60 }
 0x5c0   :  { %271 = vperm.xlu1 %814, %v266_v61  }
 0x5c6   :  { %268 = vperm.xlu2 %813, %v265_v62  }
 0x5da   :  { %v1236_v2 = vpop.xlane.xlu0 %421 }
 0x5db   :  { %v1234_v63 = vpop.xlane.xlu1 %704  ;;  %v426_v56 = vsub.f32 %v1205_v35, %v1236_v2 }
 0x5dc   :  { %v707_v3 = vsub.f32 %v1209_v37, %v1234_v63 }
 0x5dd   :  { %v428_v6 = vmul.f32 1.442695, %v426_v56 }
 0x5de   :  { %v710_v4 = vmul.f32 1.442695, %v707_v3 }
 0x5e0   :  { %848 = vpow2.f32 %v710_v4 }
 0x5e1   :  { %850 = vpow2.f32 %v428_v6 }
 0x5e3   :  { %v1242_v7 = vpop.xlane.xlu1 %424 }
 0x5e4   :  { %v427_v9 = vsub.f32 %v1215_v39, %v1242_v7 }
 0x5e6   :  { %v849_v8 = vpop.eup %848  ;;  %v430_v11 = vmul.f32 1.442695, %v427_v9 }
 0x5e7   :  { %v715_v10 = vsel %vm357_vm3, %v849_v8, 0.0  ;;  %v851_v12 = vpop.eup %850 }
 0x5e8   :  { %716 = vadd.xlane.f32.xlu0 %v715_v10  ;;  %852 = vpow2.f32 %v430_v11  ;;  %v432_v13 = vsel %vm357_vm3, %v851_v12, 0.0 }
 0x5ee   :  { %v853_v16 = vpop.eup %852 }
 0x5ef   :  { %v435_v17 = vsel %vm357_vm3, %v853_v16, 0.0 }
 0x5f0   :  { %433 = vadd.xlane.f32.xlu0 %v432_v13 }
 0x5f8   :  { %436 = vadd.xlane.f32.xlu0 %v435_v17 }
 0x619   :  { %v572_v18 = vpop.xlane.xlu0 %571 }
 0x61a   :  { %854 = vlog2.f32 %v572_v18  ;;  %v714_v19 = vpop.xlane.xlu1 %713 }
 0x61b   :  { %856 = vlog2.f32 %v714_v19 }
 0x620   :  { %v855_v20 = vpop.eup %854 }
 0x621   :  { %v857_v21 = vpop.eup %856  ;;  %v575_v22 = vpop.xlane.xlu2 %574  ;;  %v577_v43 = vmul.f32 0.6931472, %v855_v20 }
 0x622   :  { %v719_v24 = vmul.f32 0.6931472, %v857_v21  ;;  %858 = vlog2.f32 %v575_v22 }
 0x623   :  { %v580_v26 = vadd.f32 %v577_v43, %v560_v5 }
 0x624   :  { %v722_v23 = vadd.f32 %v719_v24, %v702_v44 }
 0x625   :  { %v582_v31 = vsub.f32 %v1183_v50, %v580_v26 }
 0x626   :  { %v724_v30 = vsub.f32 %v1188_v47, %v722_v23 }
 0x628   :  { %v859_v28 = vpop.eup %858 }
 0x629   :  { %v269_v29 = vpop.permute.xlu2 %268  ;;  %v579_v32 = vmul.f32 0.6931472, %v859_v28 }
 0x62a   :  { %vm273_vm8 = vcmp.eq.s32.totalorder %v264_v27, %v269_v29 }
 0x62b   :  { %v781_v34 = vsel %vm273_vm8, 1.0, %v886_v33  ;;  %v581_v40 = vadd.f32 %v579_v32, %v1221_v51 }
 0x62c   :  { %v726_v36 = vmul.f32 %v781_v34, %v724_v30  ;;  %v584_v1 = vmul.f32 %v781_v34, %v582_v31 }
 0x62d   :  { %v583_v5 = vsub.f32 %v1195_v58, %v581_v40 }
 0x62e   :  { %v728_v38 = vsel %vm357_vm3, %v726_v36, 0.0  ;;  %v586_v0 = vsel %vm357_vm3, %v584_v1, 0.0 }
 0x62f   :  { %729 = vadd.xlane.f32.xlu1 %v728_v38  ;;  %587 = vadd.xlane.f32.xlu0 %v586_v0 }
 0x632   :  { %v272_v41 = vpop.permute.xlu1 %271 }
 0x633   :  { %vm274_vm9 = vcmp.eq.s32.totalorder %v264_v27, %v272_v41 }
 0x634   :  { %v782_v47 = vsel %vm274_vm9, 1.0, %v886_v33 }
 0x635   :  { %v585_v42 = vmul.f32 %v782_v47, %v583_v5 }
 0x637   :  { %v589_v50 = vsel %vm357_vm3, %v585_v42, 0.0 }
 0x638   :  { %590 = vadd.xlane.f32.xlu2 %v589_v50 }
 0x65b   :  { %v717_v44 = vpop.xlane.xlu0 %716 }
 0x65c   :  { %860 = vlog2.f32 %v717_v44 }
 0x662   :  { %v861_v45 = vpop.eup %860 }
 0x663   :  { %v721_v46 = vmul.f32 0.6931472, %v861_v45  ;;  %v434_v48 = vpop.xlane.xlu0 %433 }
 0x664   :  { %862 = vlog2.f32 %v434_v48 }
 0x665   :  { %v723_v52 = vadd.f32 %v721_v46, %v1234_v63 }
 0x667   :  { %v725_v51 = vsub.f32 %v1209_v37, %v723_v52 }
 0x669   :  { %v727_v49 = vmul.f32 %v782_v47, %v725_v51 }
 0x66a   :  { %v863_v53 = vpop.eup %862 }
 0x66b   :  { %v439_v54 = vmul.f32 0.6931472, %v863_v53  ;;  %v437_v55 = vpop.xlane.xlu0 %436  ;;  %v731_v58 = vsel %vm357_vm3, %v727_v49, 0.0 }
 0x66c   :  { %864 = vlog2.f32 %v437_v55  ;;  %732 = vadd.xlane.f32.xlu0 %v731_v58 }
 0x66d   :  { %v442_v57 = vadd.f32 %v439_v54, %v1236_v2  ;;  %v820_v2 = vld [vmem:[%s1278_s5 + $0x3] ss:$0 sm:$0xff]  ;;  %s887_s5 = smov 127  }
 0x66e   :  { %v246_v6 = vadd.f32 %v820_v2, %v1109_v14 }
 0x66f   :  { %v444_v59 = vsub.f32 %v1205_v35, %v442_v57  ;;  %v249_v35 = vadd.f32 %v820_v2, %v1111_v15 }
 0x670   :  { %v251_v9 = vmax.f32 %v246_v6, 0.0 }
 0x671   :  { %v446_v60 = vmul.f32 %v781_v34, %v444_v59  ;;  %v252_v8 = vmax.f32 %v249_v35, 0.0 }
 0x672   :  { %v865_v61 = vpop.eup %864  ;;  %v254_v11 = vsel %vm253_vm10, %v251_v9, 0.0 }
 0x673   :  { %v441_v62 = vmul.f32 0.6931472, %v865_v61  ;;  %v448_v3 = vsel %vm357_vm3, %v446_v60, 0.0  ;;  %v255_v10 = vsel %vm253_vm10, %v252_v8, 0.0 }
 0x674   :  { %449 = vadd.xlane.f32.xlu0 %v448_v3 }
 0x675   :  { %v443_v37 = vadd.f32 %v441_v62, %v1242_v7  ;;  %v256_v7 = vadd.f32 %v255_v10, %v254_v11 }
 0x677   :  { %v445_v63 = vsub.f32 %v1215_v39, %v443_v37  ;;  %v257_v12 = vrot.slane %v256_v7, 4 }
 0x679   :  { %v447_v4 = vmul.f32 %v782_v47, %v445_v63  ;;  %v258_v13 = vadd.f32 %v257_v12, %v256_v7 }
 0x67b   :  { %v451_v56 = vsel %vm357_vm3, %v447_v4, 0.0  ;;  %v259_v19 = vrot.slane %v258_v13, 2 }
 0x67c   :  { %452 = vadd.xlane.f32.xlu0 %v451_v56 }
 0x67d   :  { %v260_v22 = vadd.f32 %v259_v19, %v258_v13 }
 0x67f   :  { %v261_v24 = vrot.slane %v260_v22, 1 }
 0x681   :  { %v262_v26 = vadd.f32 %v261_v24, %v260_v22 }
 0x6a2   :  { %v588_v39 = vpop.xlane.xlu0 %587  ;;  %v730_v28 = vpop.xlane.xlu1 %729 }
 0x6a3   :  { %v592_v17 = vsub.f32 0.0, %v588_v39  ;;  %v734_v30 = vsub.f32 0.0, %v730_v28 }
 0x6ab   :  { %v591_v16 = vpop.xlane.xlu2 %590 }
 0x6ac   :  { %v593_v18 = vsub.f32 0.0, %v591_v16 }
 0x6ae   :  { %v594_v20 = vadd.f32 %v593_v18, %v592_v17 }
 0x6b0   :  { %v595_v21 = vrot.slane %v594_v20, 4 }
 0x6b2   :  { %v596_v43 = vadd.f32 %v595_v21, %v594_v20 }
 0x6b4   :  { %v597_v15 = vrot.slane %v596_v43, 2 }
 0x6b6   :  { %v598_v14 = vadd.f32 %v597_v15, %v596_v43 }
 0x6b8   :  { %v599_v25 = vrot.slane %v598_v14, 1 }
 0x6ba   :  { %v600_v23 = vadd.f32 %v599_v25, %v598_v14 }
 0x6bc   :  { %v601_v27 = vmul.f32 %v600_v23, %v262_v26 }
 0x6be   :  { %603 = vrot.lane.b32.xlu0 %v601_v27, %s887_s5 }
 0x6df   :  { %v733_v29 = vpop.xlane.xlu0 %732 }
 0x6e0   :  { %v735_v31 = vsub.f32 0.0, %v733_v29 }
 0x6e2   :  { %v736_v32 = vadd.f32 %v735_v31, %v734_v30 }
 0x6e4   :  { %v737_v33 = vrot.slane %v736_v32, 4 }
 0x6e6   :  { %v738_v34 = vadd.f32 %v737_v33, %v736_v32 }
 0x6e7   :  { %v450_v41 = vpop.xlane.xlu0 %449 }
 0x6e8   :  { %v739_v36 = vrot.slane %v738_v34, 2  ;;  %v454_v42 = vsub.f32 0.0, %v450_v41 }
 0x6ea   :  { %v740_v1 = vadd.f32 %v739_v36, %v738_v34 }
 0x6ec   :  { %v741_v38 = vrot.slane %v740_v1, 1 }
 0x6ee   :  { %v742_v0 = vadd.f32 %v741_v38, %v740_v1 }
 0x6ef   :  { %v453_v5 = vpop.xlane.xlu0 %452 }
 0x6f0   :  { %v743_v40 = vmul.f32 %v742_v0, %v262_v26  ;;  %v455_v47 = vsub.f32 0.0, %v453_v5 }
 0x6f2   :  { %745 = vrot.lane.b32.xlu2 %v743_v40, %s888_s6  ;;  %v456_v50 = vadd.f32 %v455_v47, %v454_v42 }
 0x6f4   :  { %v457_v44 = vrot.slane %v456_v50, 4 }
 0x6f6   :  { %v458_v45 = vadd.f32 %v457_v44, %v456_v50 }
 0x6f8   :  { %v459_v46 = vrot.slane %v458_v45, 2 }
 0x6fa   :  { %v460_v48 = vadd.f32 %v459_v46, %v458_v45 }
 0x6fc   :  { %v461_v52 = vrot.slane %v460_v48, 1 }
 0x6fe   :  { %v462_v51 = vadd.f32 %v461_v52, %v460_v48 }
 0x700   :  { %v463_v53 = vmul.f32 %v462_v51, %v262_v26 }
 0x730   :  { %v604_v49 = vpop.permute.xlu0 %603 }
 0x731   :  { %v606_v54 = vadd.f32 %v604_v49, %v463_v53 }
 0x74c   :  { %v746_v55 = vpop.permute.xlu2 %745 }
 0x74d   :  { %v748_v58 = vadd.f32 %v746_v55, %v606_v54 }
 0x74f   :  { %801 = vpush %v748_v58 }
 0x780   :  { %s802_s13 = spop %801 }
 0x781   :  { %s751_s14 = smul.f32 0.0013020834, %s802_s13 }
 0x783   :  { %753 = sst [smem:[#allocation2]] %s751_s14 }
 0x784   :  { %762 = dma.smem_to_hbm %s889_s0, 16, %s760_s8, [#allocation3]  }
 0x785   :  { %878 = dma.done.wait [#allocation3], 16  }
 0x786   :  { %879 = vsyncadd [#allocation3], 4294967280 }
 0x787   :  { %767 = sfence }
 0x788   :  { %768 = vsyncpa [#allocation3], 1 }

</bundles_post_ra>
